<compile_context>
chip_gen: v7x
topology: tpu7x:2x2x1
jax: 0.10.0
libtpu: 0.0.40
codegen_flags: <defaults>
</compile_context>

<pallas_src>
import jax
import jax.numpy as jnp
from jax.experimental import pallas as pl
from jax.experimental.pallas import tpu as pltpu

NUM_CLASSES = 10
D_IN = 784
HIDDEN = 128
CLASS_PAD = 128          # lane-dense output width
DEFAULT_TB = 2048        # max batch rows per grid step (bf16 x tile ~3 MiB)
NEG_BIG = -1.0e30        # finite "minus infinity" for padded class logits


def mlp_kernel(x_ref, w1_ref, b1_ref, w2_ref, b2_ref, w3_ref, b3_ref, o_ref):
    # fc1 + ReLU (bf16 operands, f32 accumulation)
    h1 = jnp.dot(x_ref[...], w1_ref[...], preferred_element_type=jnp.float32)
    h1 = jnp.maximum(h1 + b1_ref[...], 0.0).astype(jnp.bfloat16)
    # fc2 + ReLU
    h2 = jnp.dot(h1, w2_ref[...], preferred_element_type=jnp.float32)
    h2 = jnp.maximum(h2 + b2_ref[...], 0.0).astype(jnp.bfloat16)
    # fc3: N padded to 128 lanes; padded columns carry a -1e30 bias so they
    # contribute exp() == 0 to the softmax (no in-kernel masking needed).
    logits = jnp.dot(h2, w3_ref[...], preferred_element_type=jnp.float32) + b3_ref[...]
    # Numerically-stable softmax over the class axis (f32).
    m = jnp.max(logits, axis=1, keepdims=True)
    e = jnp.exp(logits - m)
    s = jnp.sum(e, axis=1, keepdims=True)
    # EUP approximate reciprocal + one Newton step (near-f32, off VPU path).
    r = pl.reciprocal(s, approx=True)
    r = r * (2.0 - s * r)
    o_ref[...] = (e * r).astype(o_ref.dtype)


def _round_up(x, m):
    return (x + m - 1) // m * m


def _choose_tb(batch, desired=DEFAULT_TB):
    # ~half the batch (multiple of 8 sublanes), capped at `desired`, so large
    # batches always produce >= 2 grid tiles (both v7x TensorCores get work).
    half = _round_up(max(1, (batch + 1) // 2), 8)
    return min(desired, half)


def mlp_forward(x, params, *, tb=None):
    """x: (B, 1, 28, 28) or (B, 784) float32. Returns (B, 10) softmax probs (bf16)."""
    w1, b1, w2, b2, w3, b3 = params
    x2d = x.reshape(-1, D_IN)
    B = x2d.shape[0]

    if tb is None:
        tb = _choose_tb(B)
    n_tiles = pl.cdiv(B, tb)
    Bp = n_tiles * tb

    # bf16 matmul operands (biases stay f32 and are added to the f32 accum).
    # If upstream already produces bf16 activations, this cast is a no-op.
    x_p = x2d.astype(jnp.bfloat16)
    if Bp != B:
        x_p = jnp.pad(x_p, ((0, Bp - B), (0, 0)))
    w1_b = w1.astype(jnp.bfloat16)
    w2_b = w2.astype(jnp.bfloat16)
    w3_b = jnp.pad(w3, ((0, 0), (0, CLASS_PAD - NUM_CLASSES))).astype(jnp.bfloat16)
    b3_p = jnp.pad(
        b3, ((0, 0), (0, CLASS_PAD - NUM_CLASSES)), constant_values=NEG_BIG
    ).astype(jnp.float32)

    def tiled(shape):
        # Batch-tiled block: moves with the grid index.
        # If xprof still shows exposed x DMA, add pipeline_mode=pl.Buffered(3).
        return pl.BlockSpec(shape, lambda i: (i, 0))

    def resident(shape):
        # Constant block index -> stays resident in VMEM across grid steps.
        return pl.BlockSpec(shape, lambda i: (0, 0))

    out = pl.pallas_call(
        mlp_kernel,
        out_shape=jax.ShapeDtypeStruct((Bp, CLASS_PAD), jnp.bfloat16),
        grid_spec=pltpu.PrefetchScalarGridSpec(
            num_scalar_prefetch=0,
            grid=(n_tiles,),
            in_specs=[
                tiled((tb, D_IN)),                # x tile (bf16, unpadded K)
                resident((D_IN, HIDDEN)),         # w1 (bf16)
                resident((1, HIDDEN)),            # b1 (f32)
                resident((HIDDEN, HIDDEN)),       # w2 (bf16)
                resident((1, HIDDEN)),            # b2 (f32)
                resident((HIDDEN, CLASS_PAD)),    # w3 (bf16, class-padded)
                resident((1, CLASS_PAD)),         # b3 (f32, -1e30 padded)
            ],
            out_specs=tiled((tb, CLASS_PAD)),
        ),
        compiler_params=pltpu.CompilerParams(
            dimension_semantics=("parallel",),
            # Explicit budget: well under v7x's 64 MiB physical per-TC VMEM,
            # above v5e's 16 MiB scoped default so the large tiles still fit.
            vmem_limit_bytes=48 * 1024 * 1024,
        ),
    )(x_p, w1_b, b1, w2_b, b2, w3_b, b3_p)

    return out[:B, :NUM_CLASSES]


def init_params(key):
    """Deterministic init matching nn.Linear shapes (stored transposed: (in, out))."""
    ks = jax.random.split(key, 6)

    def linear(kw, kb, fan_in, fan_out):
        bound = 1.0 / jnp.sqrt(fan_in)
        w = jax.random.uniform(kw, (fan_in, fan_out), jnp.float32, -bound, bound)
        b = jax.random.uniform(kb, (1, fan_out), jnp.float32, -bound, bound)
        return w, b

    w1, b1 = linear(ks[0], ks[1], D_IN, HIDDEN)
    w2, b2 = linear(ks[2], ks[3], HIDDEN, HIDDEN)
    w3, b3 = linear(ks[4], ks[5], HIDDEN, NUM_CLASSES)
    return (w1, b1, w2, b2, w3, b3)


if __name__ == "__main__":
    key = jax.random.PRNGKey(0)
    k_x, k_p = jax.random.split(key)
    # Small batch of MNIST-shaped inputs; forward implies 784 features per sample.
    x = jax.random.normal(k_x, (8, 1, 28, 28), jnp.float32)
    params = init_params(k_p)

    out = mlp_forward(x, params)
    out = jax.block_until_ready(out)

    # Reference check in plain JAX (f32) to validate the bf16 kernel.
    w1, b1, w2, b2, w3, b3 = params
    xr = x.reshape(-1, D_IN)
    h1 = jnp.maximum(xr @ w1 + b1, 0.0)
    h2 = jnp.maximum(h1 @ w2 + b2, 0.0)
    ref = jax.nn.softmax(h2 @ w3 + b3, axis=1)

    out_f32 = out.astype(jnp.float32)
    assert out.shape == (8, NUM_CLASSES)
    # bf16 operands + bf16 output -> loosened tolerance vs the f32 reference.
    assert jnp.allclose(out_f32, ref, atol=3e-2, rtol=3e-2), float(
        jnp.max(jnp.abs(out_f32 - ref))
    )
    assert jnp.allclose(jnp.sum(out_f32, axis=1), 1.0, atol=2e-2)

    print("KERNEL_OK")
</pallas_src>

<mosaic_0001>
module attributes {stable_mosaic.version = 11 : i64} {
  func.func @mlp_kernel(%arg0: i32, %arg1: memref<8x784xbf16, #tpu.memory_space<vmem>>, %arg2: memref<784x128xbf16, #tpu.memory_space<vmem>>, %arg3: memref<1x128xf32, #tpu.memory_space<vmem>>, %arg4: memref<128x128xbf16, #tpu.memory_space<vmem>>, %arg5: memref<1x128xf32, #tpu.memory_space<vmem>>, %arg6: memref<128x128xbf16, #tpu.memory_space<vmem>>, %arg7: memref<1x128xf32, #tpu.memory_space<vmem>>, %arg8: memref<8x128xbf16, #tpu.memory_space<vmem>>) attributes {dimension_semantics = [#tpu.dimension_semantics<parallel>], iteration_bounds = array<i64: 1>, scalar_prefetch = 0 : i64, scratch_operands = 0 : i64, tpu.core_type = #tpu.core_type<tc>, window_params = [{transform_indices = @transform_0, window_bounds = array<i64: 8, 784>}, {pipeline_mode = #tpu.pipeline_mode<synchronous>, transform_indices = @transform_1, window_bounds = array<i64: 784, 128>}, {pipeline_mode = #tpu.pipeline_mode<synchronous>, transform_indices = @transform_2, window_bounds = array<i64: 1, 128>}, {pipeline_mode = #tpu.pipeline_mode<synchronous>, transform_indices = @transform_3, window_bounds = array<i64: 128, 128>}, {pipeline_mode = #tpu.pipeline_mode<synchronous>, transform_indices = @transform_4, window_bounds = array<i64: 1, 128>}, {pipeline_mode = #tpu.pipeline_mode<synchronous>, transform_indices = @transform_5, window_bounds = array<i64: 128, 128>}, {pipeline_mode = #tpu.pipeline_mode<synchronous>, transform_indices = @transform_6, window_bounds = array<i64: 1, 128>}, {transform_indices = @transform_7, window_bounds = array<i64: 8, 128>}]} {
    %c0 = arith.constant 0 : index
    %c0_0 = arith.constant 0 : index
    %0 = vector.load %arg1[%c0, %c0_0] : memref<8x784xbf16, #tpu.memory_space<vmem>>, vector<8x784xbf16>
    %c0_1 = arith.constant 0 : index
    %c0_2 = arith.constant 0 : index
    %1 = vector.load %arg2[%c0_1, %c0_2] : memref<784x128xbf16, #tpu.memory_space<vmem>>, vector<784x128xbf16>
    %cst = arith.constant dense<0.000000e+00> : vector<8x128xf32>
    %2 = tpu.matmul %0, %1, %cst {dimension_numbers = #tpu.dot_dimension_numbers<[1], [0], [0], [1], [0, 0, 1, 1], [], []>} : vector<8x784xbf16>, vector<784x128xbf16>, vector<8x128xf32> -> vector<8x128xf32>
    %c0_3 = arith.constant 0 : index
    %c0_4 = arith.constant 0 : index
    %3 = vector.load %arg3[%c0_3, %c0_4] : memref<1x128xf32, #tpu.memory_space<vmem>>, vector<1x128xf32>
    %4 = vector.broadcast %3 : vector<1x128xf32> to vector<8x128xf32>
    %5 = arith.addf %2, %4 : vector<8x128xf32>
    %cst_5 = arith.constant 0.000000e+00 : f32
    %6 = vector.broadcast %cst_5 : f32 to vector<8x128xf32>
    %7 = arith.maximumf %5, %6 : vector<8x128xf32>
    %8 = arith.truncf %7 : vector<8x128xf32> to vector<8x128xbf16>
    %c0_6 = arith.constant 0 : index
    %c0_7 = arith.constant 0 : index
    %9 = vector.load %arg4[%c0_6, %c0_7] : memref<128x128xbf16, #tpu.memory_space<vmem>>, vector<128x128xbf16>
    %cst_8 = arith.constant dense<0.000000e+00> : vector<8x128xf32>
    %10 = tpu.matmul %8, %9, %cst_8 {dimension_numbers = #tpu.dot_dimension_numbers<[1], [0], [0], [1], [0, 0, 1, 1], [], []>} : vector<8x128xbf16>, vector<128x128xbf16>, vector<8x128xf32> -> vector<8x128xf32>
    %c0_9 = arith.constant 0 : index
    %c0_10 = arith.constant 0 : index
    %11 = vector.load %arg5[%c0_9, %c0_10] : memref<1x128xf32, #tpu.memory_space<vmem>>, vector<1x128xf32>
    %12 = vector.broadcast %11 : vector<1x128xf32> to vector<8x128xf32>
    %13 = arith.addf %10, %12 : vector<8x128xf32>
    %cst_11 = arith.constant 0.000000e+00 : f32
    %14 = vector.broadcast %cst_11 : f32 to vector<8x128xf32>
    %15 = arith.maximumf %13, %14 : vector<8x128xf32>
    %16 = arith.truncf %15 : vector<8x128xf32> to vector<8x128xbf16>
    %c0_12 = arith.constant 0 : index
    %c0_13 = arith.constant 0 : index
    %17 = vector.load %arg6[%c0_12, %c0_13] : memref<128x128xbf16, #tpu.memory_space<vmem>>, vector<128x128xbf16>
    %cst_14 = arith.constant dense<0.000000e+00> : vector<8x128xf32>
    %18 = tpu.matmul %16, %17, %cst_14 {dimension_numbers = #tpu.dot_dimension_numbers<[1], [0], [0], [1], [0, 0, 1, 1], [], []>} : vector<8x128xbf16>, vector<128x128xbf16>, vector<8x128xf32> -> vector<8x128xf32>
    %c0_15 = arith.constant 0 : index
    %c0_16 = arith.constant 0 : index
    %19 = vector.load %arg7[%c0_15, %c0_16] : memref<1x128xf32, #tpu.memory_space<vmem>>, vector<1x128xf32>
    %20 = vector.broadcast %19 : vector<1x128xf32> to vector<8x128xf32>
    %21 = arith.addf %18, %20 : vector<8x128xf32>
    %cst_17 = arith.constant dense<0xFF800000> : vector<8xf32>
    %22 = vector.multi_reduction <maximumf>, %21, %cst_17 [1] : vector<8x128xf32> to vector<8xf32>
    %23 = vector.shape_cast %22 : vector<8xf32> to vector<8x1xf32>
    %24 = vector.broadcast %23 : vector<8x1xf32> to vector<8x128xf32>
    %25 = arith.subf %21, %24 : vector<8x128xf32>
    %26 = math.exp %25 : vector<8x128xf32>
    %cst_18 = arith.constant dense<0.000000e+00> : vector<8xf32>
    %27 = vector.multi_reduction <add>, %26, %cst_18 [1] : vector<8x128xf32> to vector<8xf32>
    %28 = vector.shape_cast %27 : vector<8xf32> to vector<8x1xf32>
    %29 = tpu.reciprocal %28 {approx = true} : vector<8x1xf32> -> vector<8x1xf32>
    %30 = arith.mulf %28, %29 : vector<8x1xf32>
    %cst_19 = arith.constant 2.000000e+00 : f32
    %31 = vector.broadcast %cst_19 : f32 to vector<8x1xf32>
    %32 = arith.subf %31, %30 : vector<8x1xf32>
    %33 = arith.mulf %29, %32 : vector<8x1xf32>
    %34 = vector.broadcast %33 : vector<8x1xf32> to vector<8x128xf32>
    %35 = arith.mulf %26, %34 : vector<8x128xf32>
    %36 = arith.truncf %35 : vector<8x128xf32> to vector<8x128xbf16>
    %c0_20 = arith.constant 0 : index
    %c0_21 = arith.constant 0 : index
    %37 = vector.load %arg8[%c0_20, %c0_21] : memref<8x128xbf16, #tpu.memory_space<vmem>>, vector<8x128xbf16>
    tpu.vector_store %arg8[%c0_20, %c0_21], %36 {strides = array<i32>} : memref<8x128xbf16, #tpu.memory_space<vmem>>, vector<8x128xbf16>,
    return
  }
  func.func @transform_0(%arg0: i32) -> (i32, i32) {
    %c0_i32 = arith.constant 0 : i32
    %c0_i32_0 = arith.constant 0 : i32
    return %arg0, %c0_i32 : i32, i32
  }
  func.func @transform_1(%arg0: i32) -> (i32, i32) {
    %c0_i32 = arith.constant 0 : i32
    %c0_i32_0 = arith.constant 0 : i32
    %c0_i32_1 = arith.constant 0 : i32
    return %c0_i32, %c0_i32_0 : i32, i32
  }
  func.func @transform_2(%arg0: i32) -> (i32, i32) {
    %c0_i32 = arith.constant 0 : i32
    %c0_i32_0 = arith.constant 0 : i32
    %c0_i32_1 = arith.constant 0 : i32
    return %c0_i32, %c0_i32_0 : i32, i32
  }
  func.func @transform_3(%arg0: i32) -> (i32, i32) {
    %c0_i32 = arith.constant 0 : i32
    %c0_i32_0 = arith.constant 0 : i32
    %c0_i32_1 = arith.constant 0 : i32
    return %c0_i32, %c0_i32_0 : i32, i32
  }
  func.func @transform_4(%arg0: i32) -> (i32, i32) {
    %c0_i32 = arith.constant 0 : i32
    %c0_i32_0 = arith.constant 0 : i32
    %c0_i32_1 = arith.constant 0 : i32
    return %c0_i32, %c0_i32_0 : i32, i32
  }
  func.func @transform_5(%arg0: i32) -> (i32, i32) {
    %c0_i32 = arith.constant 0 : i32
    %c0_i32_0 = arith.constant 0 : i32
    %c0_i32_1 = arith.constant 0 : i32
    return %c0_i32, %c0_i32_0 : i32, i32
  }
  func.func @transform_6(%arg0: i32) -> (i32, i32) {
    %c0_i32 = arith.constant 0 : i32
    %c0_i32_0 = arith.constant 0 : i32
    %c0_i32_1 = arith.constant 0 : i32
    return %c0_i32, %c0_i32_0 : i32, i32
  }
  func.func @transform_7(%arg0: i32) -> (i32, i32) {
    %c0_i32 = arith.constant 0 : i32
    %c0_i32_0 = arith.constant 0 : i32
    return %arg0, %c0_i32 : i32, i32
  }
}

</mosaic_0001>

<bundles_post_ra>
// kernel: tpu_custom_call.1
= control target key start
LH: loop header
LB: loop body
LE: loop exit
PB: predicated region body
PF: predicated region fallthrough
CT: control target
= control target key end

     0   :  { %12 = vsyncpa [#allocation3], 0  ;;  %s1490_s0 = inlined_call_operand.hbm [shape: bf16[8,784], index: 0, kind: input, shape index: {}]   ;;  %s1491_s1 = inlined_call_operand.hbm [shape: bf16[784,128], index: 1, kind: input, shape index: {}]   ;;  %s1492_s2 = inlined_call_operand.vmem [shape: f32[1,128], index: 2, kind: input, shape index: {}]   ;;  %s1493_s3 = inlined_call_operand.hbm [shape: bf16[128,128], index: 3, kind: input, shape index: {}]   ;;  %s1494_s4 = inlined_call_operand.vmem [shape: f32[1,128], index: 4, kind: input, shape index: {}]   ;;  %s1495_s5 = inlined_call_operand.hbm [shape: bf16[128,128], index: 5, kind: input, shape index: {}]   ;;  %s1496_s6 = inlined_call_operand.vmem [shape: f32[1,128], index: 6, kind: input, shape index: {}]   ;;  %s1497_s7 = inlined_call_operand.hbm [shape: bf16[8,128], index: 7, kind: output, shape index: {}]  }
   0x1   :  { %13 = vsyncpa [#allocation6], 0 }
   0x2   :  { %14 = vsyncpa [#allocation9], 0 }
   0x3   :  { %15 = vsyncpa [#allocation4], 0  ;;  %s1340_s24 = smov [#allocation5]   ;;  %s1222_s28 = scalar_lea.hbm %s1491_s1, 6272 }
   0x4   :  { %s31_s25 = sshll.u32 %s1340_s24, 4  ;;  %p1223_p0 = scmp.ne.s32.totalorder %s1491_s1, %s1222_s28  ;;  %s32_s25 = int_to_ptr.vmem [resolvable:$true] %s31_s25 }
   0x5   :  { %p1226_p1 = scmp.lt.u32.totalorder %s1222_s28, %s1491_s1 }
   0x7   :  { %p1228_p2 = pnand %p1226_p1, %p1223_p0 }
   0x9   :  { %1231 = shalt.err (!%p1228_p2)
}
   0xa   :  { %s1232_s10 = scalar_lea.vmem %s32_s25, 6272  ;;  %p1237_p4 = scmp.lt.s32.totalorder %s32_s25, %s32_s25 }
   0xb   :  { %p1233_p3 = scmp.ne.s32.totalorder %s32_s25, %s1232_s10  ;;  %p1238_p5 = scmp.lt.s32.totalorder %s1232_s10, %s1232_s10 }
   0xd   :  { %p1239_p6 = por %p1238_p5, %p1237_p4 }
   0xf   :  { %p1240_p7 = pnand %p1239_p6, %p1233_p3 }
  0x11   :  { %1243 = shalt.err (!%p1240_p7)
}
  0x12   :  { %s1341_s11 = smov 64   ;;  %s1342_s12 = smov 4  }
  0x13   :  { %37 = dma.hbm_to_vmem [thread:$0]  %s1491_s1, 6272, %s32_s25, [#allocation6], %s1341_s11, %s1341_s11, %s1342_s12  }
  0x14   :  { %s1343_s15 = smov [#allocation2]   ;;  %s1344_s17 = smov [#allocation7]  }
  0x15   :  { %s22_s16 = sshll.u32 %s1343_s15, 4  ;;  %s45_s18 = sshll.u32 %s1344_s17, 4  ;;  %s23_s16 = int_to_ptr.vmem [resolvable:$true] %s22_s16  ;;  %s46_s18 = int_to_ptr.vmem [resolvable:$true] %s45_s18 }
  0x16   :  { %s1244_s21 = scalar_lea.hbm %s1490_s0, 448 }
  0x17   :  { %p1245_p8 = scmp.ne.s32.totalorder %s1490_s0, %s1244_s21  ;;  %p1248_p9 = scmp.lt.u32.totalorder %s1244_s21, %s1490_s0 }
  0x19   :  { %p1250_p10 = pnand %p1248_p9, %p1245_p8 }
  0x1b   :  { %1253 = shalt.err (!%p1250_p10)
}
  0x1c   :  { %s1254_s1 = scalar_lea.vmem %s23_s16, 448  ;;  %p1259_p12 = scmp.lt.s32.totalorder %s23_s16, %s23_s16 }
  0x1d   :  { %p1255_p11 = scmp.ne.s32.totalorder %s23_s16, %s1254_s1  ;;  %p1260_p13 = scmp.lt.s32.totalorder %s1254_s1, %s1254_s1 }
  0x1f   :  { %p1261_p0 = por %p1260_p13, %p1259_p12 }
  0x21   :  { %p1262_p1 = pnand %p1261_p0, %p1255_p11 }
  0x23   :  { %1265 = shalt.err (!%p1262_p1)
}
  0x24   :  { %25 = dma.hbm_to_vmem [thread:$0]  %s1490_s0, 448, %s23_s16, [#allocation3]  }
  0x25   :  { %s1266_s30 = scalar_lea.hbm %s1493_s3, 1024 }
  0x26   :  { %p1267_p2 = scmp.ne.s32.totalorder %s1493_s3, %s1266_s30  ;;  %p1270_p3 = scmp.lt.u32.totalorder %s1266_s30, %s1493_s3 }
  0x28   :  { %p1272_p4 = pnand %p1270_p3, %p1267_p2 }
  0x2a   :  { %1275 = shalt.err (!%p1272_p4)
}
  0x2b   :  { %s1276_s14 = scalar_lea.vmem %s46_s18, 1024  ;;  %p1281_p6 = scmp.lt.s32.totalorder %s46_s18, %s46_s18 }
  0x2c   :  { %p1277_p5 = scmp.ne.s32.totalorder %s46_s18, %s1276_s14  ;;  %p1282_p7 = scmp.lt.s32.totalorder %s1276_s14, %s1276_s14 }
  0x2e   :  { %p1283_p8 = por %p1282_p7, %p1281_p6 }
  0x30   :  { %p1284_p9 = pnand %p1283_p8, %p1277_p5 }
  0x32   :  { %1287 = shalt.err (!%p1284_p9)
}
  0x33   :  { %51 = dma.hbm_to_vmem [thread:$0]  %s1493_s3, 1024, %s46_s18, [#allocation6], %s1341_s11, %s1341_s11, %s1342_s12  }
  0x34   :  { %s1345_s16 = smov [#allocation8]   ;;  %s1288_s21 = scalar_lea.hbm %s1495_s5, 1024 }
  0x35   :  { %s59_s17 = sshll.u32 %s1345_s16, 4  ;;  %p1289_p10 = scmp.ne.s32.totalorder %s1495_s5, %s1288_s21  ;;  %s60_s17 = int_to_ptr.vmem [resolvable:$true] %s59_s17 }
  0x36   :  { %p1292_p11 = scmp.lt.u32.totalorder %s1288_s21, %s1495_s5 }
  0x38   :  { %p1294_p12 = pnand %p1292_p11, %p1289_p10 }
  0x3a   :  { %1297 = shalt.err (!%p1294_p12)
}
  0x3b   :  { %s1298_s1 = scalar_lea.vmem %s60_s17, 1024  ;;  %p1303_p0 = scmp.lt.s32.totalorder %s60_s17, %s60_s17 }
  0x3c   :  { %p1299_p13 = scmp.ne.s32.totalorder %s60_s17, %s1298_s1  ;;  %p1304_p1 = scmp.lt.s32.totalorder %s1298_s1, %s1298_s1 }
  0x3e   :  { %p1305_p2 = por %p1304_p1, %p1303_p0 }
  0x40   :  { %p1306_p3 = pnand %p1305_p2, %p1299_p13 }
  0x42   :  { %1309 = shalt.err (!%p1306_p3)
}
  0x43   :  { %65 = dma.hbm_to_vmem [thread:$0]  %s1495_s5, 1024, %s60_s17, [#allocation9], %s1341_s11, %s1341_s11, %s1342_s12  }
  0x44   :  { %1332 = dma.done.wait [#allocation3], 448  }
  0x45   :  { %1333 = vsyncadd [#allocation3], 4294966848 }
  0x46   :  { %1334 = dma.done.wait [#allocation6], 7296  }
  0x47   :  { %1335 = vsyncadd [#allocation6], 4294960000 }
  0x48   :  { %1336 = dma.done.wait [#allocation9], 1024  }
  0x49   :  { %1337 = vsyncadd [#allocation9], 4294966272  ;;  %v1146_v0 = vld [vmem:[#allocation5 + $0x40] sm:$0xff]   ;;  %v1150_v4 = vld [vmem:[#allocation5 + $0x48] sm:$0xff]   ;;  %v1346_v43 = vmov 0.0   ;;  %vm1347_vm0 = vmmov 0  }
  0x4a   :  { %v1147_v1 = vld [vmem:[#allocation5] sm:$0xff]   ;;  %1005 = vmatprep.subr.bf16.mxu0 %v1146_v0  ;;  %v1151_v5 = vld [vmem:[#allocation5 + $0x8] sm:$0xff]   ;;  %v1154_v8 = vld [vmem:[#allocation5 + $0x50] sm:$0xff]   ;;  %vm508_vm1 = vcmask 130048  }
  0x4b   :  { %v1148_v2 = vld [vmem:[#allocation5 + $0xc0] sm:$0xff]   ;;  %1006 = vmatpush3.bf16.msra.mxu0 %v1147_v1  ;;  %v1152_v6 = vld [vmem:[#allocation5 + $0xc8] sm:$0xff]   ;;  %v1155_v9 = vld [vmem:[#allocation5 + $0x10] sm:$0xff]  }
  0x4c   :  { %v1149_v3 = vld [vmem:[#allocation5 + $0x80] sm:$0xff]   ;;  %1027 = vmatprep.subr.bf16.mxu1 %v1148_v2  ;;  %1007 = vmatprep.subr.bf16.mxu0 %v1150_v4  ;;  %v1153_v7 = vld [vmem:[#allocation5 + $0x88] sm:$0xff]   ;;  %v1156_v10 = vld [vmem:[#allocation5 + $0xd0] sm:$0xff]  }
  0x4d   :  { %1028 = vmatpush3.bf16.msra.mxu1 %v1149_v3  ;;  %v1157_v11 = vld [vmem:[#allocation5 + $0x90] sm:$0xff]   ;;  %v1158_v12 = vld [vmem:[#allocation5 + $0x58] sm:$0xff]   ;;  %v1162_v16 = vld [vmem:[#allocation5 + $0x60] sm:$0xff]  }
  0x4e   :  { %1029 = vmatprep.subr.bf16.mxu1 %v1152_v6  ;;  %v1159_v13 = vld [vmem:[#allocation5 + $0x18] sm:$0xff]   ;;  %v1163_v17 = vld [vmem:[#allocation5 + $0x20] sm:$0xff]   ;;  %v1166_v20 = vld [vmem:[#allocation5 + $0x68] sm:$0xff]  }
  0x4f   :  { %1008 = vmatpush3.bf16.msra.mxu0 %v1151_v5  ;;  %v1160_v14 = vld [vmem:[#allocation5 + $0xd8] sm:$0xff]   ;;  %v1164_v18 = vld [vmem:[#allocation5 + $0xe0] sm:$0xff]   ;;  %v1167_v21 = vld [vmem:[#allocation5 + $0x28] sm:$0xff]  }
  0x50   :  { %1009 = vmatprep.subr.bf16.mxu0 %v1154_v8  ;;  %v1161_v15 = vld [vmem:[#allocation5 + $0x98] sm:$0xff]   ;;  %v1165_v19 = vld [vmem:[#allocation5 + $0xa0] sm:$0xff]   ;;  %v1168_v22 = vld [vmem:[#allocation5 + $0xe8] sm:$0xff]  }
  0x51   :  { %1030 = vmatpush3.bf16.msra.mxu1 %v1153_v7  ;;  %v1169_v23 = vld [vmem:[#allocation5 + $0xa8] sm:$0xff]   ;;  %v1170_v24 = vld [vmem:[#allocation5 + $0x70] sm:$0xff]   ;;  %v1174_v28 = vld [vmem:[#allocation5 + $0x78] sm:$0xff]  }
  0x52   :  { %1031 = vmatprep.subr.bf16.mxu1 %v1156_v10  ;;  %v1171_v25 = vld [vmem:[#allocation5 + $0x30] sm:$0xff]   ;;  %v1175_v29 = vld [vmem:[#allocation5 + $0x38] sm:$0xff]   ;;  %v81_v31 = vld [vmem:[#allocation2] sm:$0xff] }
  0x53   :  { %1010 = vmatpush3.bf16.msra.mxu0 %v1155_v9  ;;  %v1172_v26 = vld [vmem:[#allocation5 + $0xf0] sm:$0xff]   ;;  %v1176_v30 = vld [vmem:[#allocation5 + $0xf8] sm:$0xff]   ;;  %v930_v32 = vcombine.low %v81_v31, %v81_v31  ;;  %v931_v33 = vcombine.high %v81_v31, %v81_v31  ;;  %v1180_v35 = vld [vmem:[#allocation5 + $0x140] sm:$0xff]  }
  0x54   :  { %1011 = vmatprep.subr.bf16.mxu0 %v1158_v12  ;;  %v1173_v27 = vld [vmem:[#allocation5 + $0xb0] sm:$0xff]   ;;  %v1179_v34 = vld [vmem:[#allocation5 + $0xb8] sm:$0xff]   ;;  %v1183_v39 = vld [vmem:[#allocation5 + $0x100] sm:$0xff]  }
  0x55   :  { %1032 = vmatpush3.bf16.msra.mxu1 %v1157_v11  ;;  %v82_v36 = vld [vmem:[#allocation2 + $0x8] sm:$0xff]  ;;  %544 = vmatprep.mubr.bf16.mxu0 %v931_v33  ;;  %v1188_v45 = vld [vmem:[#allocation5 + $0x158] sm:$0xff]   ;;  %v1190_v47 = vld [vmem:[#allocation5 + $0x160] sm:$0xff]  }
  0x56   :  { %1033 = vmatprep.subr.bf16.mxu1 %v1160_v14  ;;  %v932_v37 = vcombine.low %v82_v36, %v82_v36  ;;  %v933_v38 = vcombine.high %v82_v36, %v82_v36  ;;  %v1184_v40 = vld [vmem:[#allocation5 + $0x148] sm:$0xff]   ;;  %v1186_v42 = vld [vmem:[#allocation5 + $0x150] sm:$0xff]   ;;  %v1189_v46 = vld [vmem:[#allocation5 + $0x118] sm:$0xff]  }
  0x57   :  { %1012 = vmatpush3.bf16.msra.mxu0 %v1159_v13  ;;  %v1185_v41 = vld [vmem:[#allocation5 + $0x108] sm:$0xff]   ;;  %v1187_v44 = vld [vmem:[#allocation5 + $0x110] sm:$0xff]   ;;  %v1191_v48 = vld [vmem:[#allocation5 + $0x120] sm:$0xff]  }
  0x58   :  { %1013 = vmatprep.subr.bf16.mxu0 %v1162_v16  ;;  %584 = vmatprep.mubr.bf16.mxu1 %v933_v38  ;;  %v1192_v49 = vld [vmem:[#allocation5 + $0x168] sm:$0xff]   ;;  %v1198_v50 = vld [vmem:[#allocation5 + $0x180] sm:$0xff]   ;;  %v83_v51 = vld [vmem:[#allocation2 + $0x10] sm:$0xff] }
  0x59   :  { %1034 = vmatpush3.bf16.msra.mxu1 %v1161_v15  ;;  %v1193_v52 = vld [vmem:[#allocation5 + $0x128] sm:$0xff]   ;;  %v935_v53 = vcombine.high %v83_v51, %v83_v51  ;;  %v1201_v54 = vld [vmem:[#allocation2 + $0x18] ss:$0 sps:$4 sm:$0xff]   ;;  %v1194_v55 = vld [vmem:[#allocation5 + $0x170] sm:$0xff]   ;;  %v934_v59 = vcombine.low %v83_v51, %v83_v51 }
  0x5a   :  { %1035 = vmatprep.subr.bf16.mxu1 %v1164_v18  ;;  %v1195_v56 = vld [vmem:[#allocation5 + $0x130] sm:$0xff]   ;;  %v1196_v57 = vld [vmem:[#allocation5 + $0x178] sm:$0xff]   ;;  %v1202_v60 = vld [vmem:[#allocation7] sm:$0xff]  }
  0x5b   :  { %1014 = vmatpush3.bf16.msra.mxu0 %v1163_v17  ;;  %v1197_v58 = vld [vmem:[#allocation5 + $0x138] sm:$0xff]   ;;  %v1203_v61 = vld [vmem:[#allocation7 + $0x8] sm:$0xff]   ;;  %v1205_v63 = vld [vmem:[#allocation7 + $0x18] sm:$0xff]  }
  0x5c   :  { %1015 = vmatprep.subr.bf16.mxu0 %v1166_v20  ;;  %v1204_v62 = vld [vmem:[#allocation7 + $0x10] sm:$0xff]   ;;  %v1206_v0 = vld [vmem:[#allocation7 + $0x20] sm:$0xff]   ;;  %v1207_v1 = vld [vmem:[#allocation7 + $0x28] sm:$0xff]  }
  0x5d   :  { %1036 = vmatpush3.bf16.msra.mxu1 %v1165_v19  ;;  %v1208_v2 = vld [vmem:[#allocation7 + $0x30] sm:$0xff]   ;;  %v1209_v3 = vld [vmem:[#allocation7 + $0x38] sm:$0xff]   ;;  %v1210_v4 = vld [vmem:[#allocation8] sm:$0xff]  }
  0x5e   :  { %1037 = vmatprep.subr.bf16.mxu1 %v1168_v22  ;;  %v1211_v5 = vld [vmem:[#allocation8 + $0x8] sm:$0xff]   ;;  %v1212_v6 = vld [vmem:[#allocation8 + $0x10] sm:$0xff]   ;;  %v1213_v7 = vld [vmem:[#allocation8 + $0x18] sm:$0xff]  }
  0x5f   :  { %1016 = vmatpush3.bf16.msra.mxu0 %v1167_v21  ;;  %v1214_v8 = vld [vmem:[#allocation8 + $0x20] sm:$0xff]   ;;  %v1215_v9 = vld [vmem:[#allocation8 + $0x28] sm:$0xff]   ;;  %v929_v11 = vld [vmem:[%s1492_s2] ss:$0 sm:$0xff] }
  0x60   :  { %1017 = vmatprep.subr.bf16.mxu0 %v1170_v24  ;;  %v1216_v36 = vld [vmem:[#allocation8 + $0x30] sm:$0xff]   ;;  %v987_v38 = vld [vmem:[%s1494_s4] ss:$0 sm:$0xff]  ;;  %s1348_s4 = smov [#allocation10]  }
  0x61   :  { %1038 = vmatpush3.bf16.msra.mxu1 %v1169_v23 }
  0x62   :  { %1039 = vmatprep.subr.bf16.mxu1 %v1172_v26 }
  0x63   :  { %1018 = vmatpush3.bf16.msra.mxu0 %v1171_v25 }
  0x64   :  { %1019 = vmatprep.subr.bf16.mxu0 %v1174_v28 }
  0x65   :  { %1040 = vmatpush3.bf16.msra.mxu1 %v1173_v27 }
  0x66   :  { %1041 = vmatprep.subr.bf16.mxu1 %v1176_v30 }
  0x67   :  { %1020 = vmatpush3.bf16.msra.mxu0 %v1175_v29 }
  0x68   :  { %1049 = vmatprep.subr.bf16.mxu0 %v1180_v35 }
  0x69   :  { %1042 = vmatpush3.bf16.msra.mxu1 %v1179_v34 }
  0x6a   :  { %545 = vmatmul.mubr.bf16.vlgmr.msra.gmra.mrb[0].mxu0 %v930_v32  ;;  %1091 = vmatprep.subr.bf16.mxu1 %v1346_v43 }
  0x6b   :  { %1050 = vmatpush3.bf16.msra.mxu0 %v1183_v39  ;;  %624 = vmatprep.mubr.bf16.mxu0 %v935_v53 }
  0x6c   :  { %585 = vmatmul.mubr.bf16.vlgmr.msra.gmra.mrb[0].mxu1 %v932_v37  ;;  %1051 = vmatprep.subr.bf16.mxu0 %v1184_v40  ;;  %v1217_v37 = vld [vmem:[#allocation8 + $0x38] sm:$0xff]  }
  0x6d   :  { %1093 = vmatprep.mubr.msk.bf16.mxu1 %vm1347_vm0, %v1346_v43  ;;  %1092 = vmatpush3.bf16.msra.mxu1 %v1198_v50 }
  0x6e   :  { %1097 = vmatprep.subr.bf16.mxu1 %v1346_v43 }
  0x6f   :  { %1052 = vmatpush3.bf16.msra.mxu0 %v1185_v41 }
  0x70   :  { %1053 = vmatprep.subr.bf16.mxu0 %v1186_v42 }
  0x73   :  { %1054 = vmatpush3.bf16.msra.mxu0 %v1187_v44 }
  0x74   :  { %1055 = vmatprep.subr.bf16.mxu0 %v1188_v45  ;;  %1094 = vmatmul.mubr.msk.bf16.vlgmr.msra.gmra.mrb[4].mxu1 %vm508_vm1, %v1201_v54 }
  0x75   :  { %1113 = vmatprep.mubr.msk.bf16.mxu1 %vm1347_vm0, %v1346_v43  ;;  %1098 = vmatpush3.bf16.msra.mxu1 %v1202_v60 }
  0x76   :  { %1099 = vmatprep.subr.bf16.mxu1 %v1346_v43 }
  0x77   :  { %1056 = vmatpush3.bf16.msra.mxu0 %v1189_v46 }
  0x78   :  { %1057 = vmatprep.subr.bf16.mxu0 %v1190_v47  ;;  %v996_v47 = vld [vmem:[%s1496_s6] ss:$0 sm:$0xff]  ;;  %s918_s6 = sshll.u32 %s1348_s4, 4  ;;  %s919_s6 = int_to_ptr.vmem [resolvable:$true] %s918_s6 }
  0x79   :  { %1100 = vmatpush3.bf16.msra.mxu1 %v1203_v61  ;;  %s1310_s28 = scalar_lea.vmem %s919_s6, 64  ;;  %p1315_p5 = scmp.lt.s32.totalorder %s919_s6, %s919_s6 }
  0x7a   :  { %1101 = vmatprep.subr.bf16.mxu1 %v1346_v43  ;;  %p1311_p4 = scmp.ne.s32.totalorder %s919_s6, %s1310_s28  ;;  %p1316_p6 = scmp.lt.s32.totalorder %s1310_s28, %s1310_s28 }
  0x7b   :  { %1058 = vmatpush3.bf16.msra.mxu0 %v1191_v48 }
  0x7c   :  { %1059 = vmatprep.subr.bf16.mxu0 %v1192_v49  ;;  %p1317_p7 = por %p1316_p6, %p1315_p5 }
  0x7d   :  { %1102 = vmatpush3.bf16.msra.mxu1 %v1204_v62 }
  0x7e   :  { %1103 = vmatprep.subr.bf16.mxu1 %v1346_v43  ;;  %p1318_p8 = pnand %p1317_p7, %p1311_p4 }
  0x7f   :  { %1060 = vmatpush3.bf16.msra.mxu0 %v1193_v52 }
  0x80   :  { %1061 = vmatprep.subr.bf16.mxu0 %v1194_v55 }
  0x81   :  { %1104 = vmatpush3.bf16.msra.mxu1 %v1205_v63 }
  0x82   :  { %1105 = vmatprep.subr.bf16.mxu1 %v1346_v43 }
  0x83   :  { %1062 = vmatpush3.bf16.msra.mxu0 %v1195_v56 }
  0x84   :  { %1063 = vmatprep.subr.bf16.mxu0 %v1196_v57 }
  0x85   :  { %1106 = vmatpush3.bf16.msra.mxu1 %v1206_v0 }
  0x86   :  { %1107 = vmatprep.subr.bf16.mxu1 %v1346_v43 }
  0x87   :  { %1064 = vmatpush3.bf16.msra.mxu0 %v1197_v58 }
  0x88   :  { %1117 = vmatprep.subr.bf16.mxu0 %v1346_v43 }
  0x89   :  { %1108 = vmatpush3.bf16.msra.mxu1 %v1207_v1 }
  0x8a   :  { %625 = vmatmul.mubr.bf16.vlgmr.msra.gmra.mrb[4].mxu0 %v934_v59  ;;  %1109 = vmatprep.subr.bf16.mxu1 %v1346_v43 }
  0x8b   :  { %1133 = vmatprep.mubr.msk.bf16.mxu0 %vm1347_vm0, %v1346_v43  ;;  %1118 = vmatpush3.bf16.msra.mxu0 %v1210_v4 }
  0x8c   :  { %1119 = vmatprep.subr.bf16.mxu0 %v1346_v43 }
  0x8d   :  { %1110 = vmatpush3.bf16.msra.mxu1 %v1208_v2 }
  0x8e   :  { %1111 = vmatprep.subr.bf16.mxu1 %v1346_v43 }
  0x8f   :  { %1120 = vmatpush3.bf16.msra.mxu0 %v1211_v5 }
  0x90   :  { %1121 = vmatprep.subr.bf16.mxu0 %v1346_v43 }
  0x91   :  { %1112 = vmatpush3.bf16.msra.mxu1 %v1209_v3 }
  0x93   :  { %1122 = vmatpush3.bf16.msra.mxu0 %v1212_v6 }
  0x94   :  { %1123 = vmatprep.subr.bf16.mxu0 %v1346_v43 }
  0x97   :  { %1124 = vmatpush3.bf16.msra.mxu0 %v1213_v7 }
  0x98   :  { %1125 = vmatprep.subr.bf16.mxu0 %v1346_v43 }
  0x9b   :  { %1126 = vmatpush3.bf16.msra.mxu0 %v1214_v8 }
  0x9c   :  { %1127 = vmatprep.subr.bf16.mxu0 %v1346_v43 }
  0x9f   :  { %1128 = vmatpush3.bf16.msra.mxu0 %v1215_v9 }
  0xa0   :  { %1129 = vmatprep.subr.bf16.mxu0 %v1346_v43 }
  0xa3   :  { %1130 = vmatpush3.bf16.msra.mxu0 %v1216_v36 }
  0xa4   :  { %1131 = vmatprep.subr.bf16.mxu0 %v1346_v43 }
  0xa7   :  { %1132 = vmatpush3.bf16.msra.mxu0 %v1217_v37 }
 0x13d   :  { %v1021_v10 = vpop.f32.mrb[0].mxu0 }
 0x13e   :  { %v1022_v12 = vpop.f32.mrb[1].mxu0 }
 0x13f   :  { %v1023_v13 = vadd.f32 %v1022_v12, %v1021_v10  ;;  %v1024_v14 = vpop.f32.mrb[2].mxu0  ;;  %v1043_v15 = vpop.f32.mrb[0].mxu1 }
 0x140   :  { %v1025_v16 = vpop.f32.mrb[3].mxu0  ;;  %v1044_v17 = vpop.f32.mrb[1].mxu1 }
 0x141   :  { %v547_v18 = vadd.f32 %v1023_v13, %v929_v11  ;;  %v1045_v19 = vadd.f32 %v1044_v17, %v1043_v15  ;;  %v1046_v20 = vpop.f32.mrb[2].mxu1 }
 0x142   :  { %v1047_v21 = vpop.f32.mrb[3].mxu1 }
 0x143   :  { %v587_v22 = vadd.f32 %v1045_v19, %v547_v18 }
 0x147   :  { %v666_v23 = vpop.f32.mrb[4].mxu1 }
 0x148   :  { %v1095_v24 = vpop.f32.mrb[5].mxu1 }
 0x149   :  { %v669_v25 = vpop.f32.mrb[6].mxu1 }
 0x14a   :  { %v1096_v26 = vpop.f32.mrb[7].mxu1 }
 0x15d   :  { %v1065_v27 = vpop.f32.mrb[4].mxu0 }
 0x15e   :  { %v1066_v28 = vpop.f32.mrb[5].mxu0 }
 0x15f   :  { %v1067_v29 = vadd.f32 %v1066_v28, %v1065_v27  ;;  %v1068_v30 = vpop.f32.mrb[6].mxu0 }
 0x160   :  { %v1069_v31 = vpop.f32.mrb[7].mxu0 }
 0x161   :  { %v627_v32 = vadd.f32 %v1067_v29, %v587_v22 }
 0x163   :  { %v667_v33 = vadd.f32 %v666_v23, %v627_v32 }
 0x165   :  { %v672_v34 = vmax.f32 %v667_v33, 0.0 }
 0x167   :  { %v673_v35 = vpack.c.bf16 %v672_v34, %v672_v34 }
 0x169   :  { %1114 = vmatmul.mubr.bf16.vlgmr.msra.gmra.mrb[8].mxu1 %v673_v35 }
 0x23c   :  { %v779_v39 = vpop.f32.mrb[8].mxu1 }
 0x23d   :  { %v780_v40 = vadd.f32 %v987_v38, %v779_v39  ;;  %v1115_v41 = vpop.f32.mrb[9].mxu1 }
 0x23e   :  { %v782_v42 = vpop.f32.mrb[10].mxu1 }
 0x23f   :  { %v785_v44 = vmax.f32 %v780_v40, 0.0  ;;  %v1116_v45 = vpop.f32.mrb[11].mxu1 }
 0x241   :  { %v786_v46 = vpack.c.bf16 %v785_v44, %v785_v44 }
 0x243   :  { %1134 = vmatmul.mubr.bf16.vlgmr.msra.gmra.mrb[8].mxu0 %v786_v46 }
 0x316   :  { %v892_v48 = vpop.f32.mrb[8].mxu0 }
 0x317   :  { %v893_v43 = vadd.f32 %v996_v47, %v892_v48  ;;  %v1135_v49 = vpop.f32.mrb[9].mxu0 }
 0x318   :  { %v895_v50 = vpop.f32.mrb[10].mxu0 }
 0x319   :  { %898 = vmax.xlane.f32.xlu0 %v893_v43  ;;  %v1136_v51 = vpop.f32.mrb[11].mxu0 }
 0x3a6   :  { %v899_v52 = vpop.xlane.xlu0 %898 }
 0x3a7   :  { %v900_v53 = vsub.f32 %v893_v43, %v899_v52 }
 0x3a9   :  { %v901_v54 = vmul.f32 1.442695, %v900_v53 }
 0x3ab   :  { %1218 = vpow2.f32 %v901_v54 }
 0x3b5   :  { %v1219_v55 = vpop.eup %1218 }
 0x3b6   :  { %903 = vadd.xlane.f32.xlu0 %v1219_v55 }
 0x443   :  { %v904_v56 = vpop.xlane.xlu0 %903 }
 0x444   :  { %1220 = vrcp.f32 %v904_v56 }
 0x44e   :  { %v1221_v57 = vpop.eup %1220 }
 0x44f   :  { %v906_v58 = vmul.f32 %v1221_v57, %v904_v56 }
 0x451   :  { %v907_v59 = vsub.f32 2.0, %v906_v58 }
 0x453   :  { %v908_v60 = vmul.f32 %v1221_v57, %v907_v59 }
 0x455   :  { %v909_v61 = vmul.f32 %v1219_v55, %v908_v60 }
 0x457   :  { %v910_v62 = vpack.c.bf16 %v909_v61, %v909_v61 }
 0x459   :  { %911 = vst [vmem:[#allocation10] sm:$0xf] %v910_v62 }
 0x45a   :  { %1321 = shalt.err (!%p1318_p8)
}
 0x45b   :  { %s1322_s8 = scalar_lea.hbm %s1497_s7, 64 }
 0x45c   :  { %p1323_p9 = scmp.ne.s32.totalorder %s1497_s7, %s1322_s8  ;;  %p1326_p10 = scmp.lt.u32.totalorder %s1322_s8, %s1497_s7 }
 0x45e   :  { %p1328_p11 = pnand %p1326_p10, %p1323_p9 }
 0x460   :  { %1331 = shalt.err (!%p1328_p11)
}
 0x461   :  { %921 = dma.vmem_to_hbm [thread:$0]  %s919_s6, 64, %s1497_s7, [#allocation4]  }
 0x462   :  { %1338 = dma.done.wait [#allocation4], 64  }
 0x463   :  { %1339 = vsyncadd [#allocation4], 4294967232 }
 0x464   :  { %925 = vsyncpa [#allocation3], 1 }
 0x465   :  { %926 = vsyncpa [#allocation6], 1 }
 0x466   :  { %927 = vsyncpa [#allocation9], 1 }
 0x467   :  { %928 = vsyncpa [#allocation4], 1 }

</bundles_post_ra>
